<compile_context>
chip_gen: v7x
topology: tpu7x:2x2x1
jax: 0.10.0
libtpu: 0.0.40
codegen_flags: <defaults>
</compile_context>

<pallas_src>
import jax
import jax.numpy as jnp
from jax import lax
from jax.experimental import pallas as pl
from jax.experimental.pallas import tpu as pltpu


def _round_up(x, m):
    return ((x + m - 1) // m) * m


# ----------------------------------------------------------------------------
# Exact (erf-based) GELU, matching torch.nn.GELU() default.
# Abramowitz & Stegun 7.1.26 polynomial (|abs error| <= 1.5e-7).  The rational
# term 1/(1+p*a) is computed with the EUP approximate reciprocal (frees the
# VALU slot) plus one Newton-Raphson refinement so the result stays at f32
# accuracy (error ~ rel_err^2, far below the 1e-4 tolerance).
# ----------------------------------------------------------------------------
def _erf(x):
    a = jnp.abs(x)
    d = 1.0 + 0.3275911 * a
    t = pl.reciprocal(d, approx=True)          # EUP slot
    t = t * (2.0 - d * t)                      # one Newton step -> f32 accurate
    poly = t * (0.254829592
                + t * (-0.284496736
                       + t * (1.421413741
                              + t * (-1.453152027
                                     + t * 1.061405429))))
    e = 1.0 - poly * jnp.exp(-a * a)
    return jnp.where(x >= 0.0, e, -e)


def _gelu_exact(x):
    return 0.5 * x * (1.0 + _erf(x * 0.7071067811865476))


# ----------------------------------------------------------------------------
# Kernel 1: per-tile partial sums / sums-of-squares for BN batch statistics.
# Input is the lane-dense packed view (rows of pack*C = 128 lanes).  Each grid
# step writes its OWN (8, W) partial block ("parallel" -> megacore shards it);
# the cross-sublane/cross-tile finish is done on the host.  Zero-padded rows
# do not perturb either sum.
# ----------------------------------------------------------------------------
def bn_stats_kernel(xp_ref, sum_ref, sumsq_ref):
    x = xp_ref[...]                                          # (trs, W)
    xr = x.reshape(x.shape[0] // 8, 8, x.shape[1])           # sublane-group view
    sum_ref[...] = jnp.sum(xr, axis=0)                       # (8, W), pure VALU adds
    sumsq_ref[...] = jnp.sum(xr * xr, axis=0)


def bn_stats(xp, trs, n_steps):
    Rp_pad, W = xp.shape
    return pl.pallas_call(
        bn_stats_kernel,
        out_shape=(jax.ShapeDtypeStruct((n_steps * 8, W), jnp.float32),
                   jax.ShapeDtypeStruct((n_steps * 8, W), jnp.float32)),
        grid=(n_steps,),
        in_specs=[pl.BlockSpec((trs, W), lambda i: (i, 0))],
        out_specs=(pl.BlockSpec((8, W), lambda i: (i, 0)),
                   pl.BlockSpec((8, W), lambda i: (i, 0))),
        compiler_params=pltpu.CompilerParams(
            dimension_semantics=("parallel",)),
    )(xp)


# ----------------------------------------------------------------------------
# Kernel 2: fused Linear(C->I) + exact GELU + Linear(I->C).  BN is already
# folded into w1/b1 on the host, so the row tile goes straight to the MXU.
# Row-tiled grid, "parallel" (megacore sharding on v7x).  Weights/biases use
# constant index maps -> fetched once, resident in VMEM.
# ----------------------------------------------------------------------------
def ffn_kernel(x_ref, w1_ref, b1_ref, w2_ref, b2_ref, o_ref):
    h = jnp.dot(x_ref[...], w1_ref[...],
                preferred_element_type=jnp.float32) + b1_ref[...]   # (tr, I)
    h = _gelu_exact(h)
    o_ref[...] = jnp.dot(h, w2_ref[...],
                         preferred_element_type=jnp.float32) + b2_ref[...]


def ffn_fused(x2, w1, b1, w2, b2, tr):
    R_pad, C = x2.shape
    I = w1.shape[1]
    const = lambda i: (0, 0)
    return pl.pallas_call(
        ffn_kernel,
        out_shape=jax.ShapeDtypeStruct((R_pad, C), jnp.float32),
        grid=(R_pad // tr,),
        in_specs=[
            pl.BlockSpec((tr, C), lambda i: (i, 0)),   # x row tile
            pl.BlockSpec((C, I), const),               # BN-folded w1 (resident)
            pl.BlockSpec((1, I), const),               # BN-folded b1
            pl.BlockSpec((I, C), const),               # w2 (resident)
            pl.BlockSpec((1, C), const),               # b2
        ],
        out_specs=pl.BlockSpec((tr, C), lambda i: (i, 0)),
        compiler_params=pltpu.CompilerParams(
            dimension_semantics=("parallel",)),
    )(x2, w1, b1, w2, b2)


# ----------------------------------------------------------------------------
# Full FFBlock forward.
# ----------------------------------------------------------------------------
def ff_block_forward(x, params, *, eps=1e-5, row_tile=1024, stats_row_tile=2048):
    B, L, C = x.shape
    R = B * L
    x2 = x.reshape(R, C)

    # Row tiling for the FFN pass: biggest tile up to `row_tile`, but keep >= 2
    # grid steps so the "parallel" axis actually splits across both v7x TCs.
    n_steps = max(2, pl.cdiv(R, row_tile))
    tr = _round_up(pl.cdiv(R, n_steps), 8)
    R_pad = tr * n_steps
    if R_pad != R:
        x2 = jnp.pad(x2, ((0, R_pad - R), (0, 0)))   # zero rows: stats-neutral, sliced off later

    # ---- Pass 1: BN batch statistics on a lane-dense packed view ----------
    pack = 128 // C if (C < 128 and 128 % C == 0 and R_pad % (128 // C) == 0) else 1
    xp = x2.reshape(R_pad // pack, pack * C)          # free row-major repack
    Rp = xp.shape[0]
    n_steps_s = max(2, pl.cdiv(Rp, stats_row_tile))
    trs = _round_up(pl.cdiv(Rp, n_steps_s), 8)
    Rp_pad = trs * n_steps_s
    if Rp_pad != Rp:
        xp = jnp.pad(xp, ((0, Rp_pad - Rp), (0, 0)))

    psum, psumsq = bn_stats(xp, trs, n_steps_s)
    s = psum.sum(axis=0).reshape(pack, C).sum(axis=0)        # (C,) channel sums
    sq = psumsq.sum(axis=0).reshape(pack, C).sum(axis=0)     # (C,)

    mean = s / R
    var = jnp.maximum(sq / R - mean * mean, 0.0)             # biased variance
    rstd = lax.rsqrt(var + eps)

    # ---- Fold BN completely into the first Linear (tiny host-side (C,I) op)
    scale = params["bn_gamma"].reshape(-1) * rstd            # (C,)
    shift = params["bn_beta"].reshape(-1) - mean * scale     # (C,)
    w1f = params["w1"] * scale[:, None]                      # (C, I)
    b1f = params["b1"].reshape(1, -1) + shift[None, :] @ params["w1"]   # (1, I)

    # ---- Pass 2: fused Linear + exact GELU + Linear ------------------------
    out2 = ffn_fused(x2, w1f, b1f,
                     params["w2"], params["b2"].reshape(1, -1), tr)
    return out2[:R].reshape(B, L, C)


# Pure-JAX reference (same semantics) used as a correctness check.
def _ref_forward(x, params, eps=1e-5):
    B, L, C = x.shape
    x2 = x.reshape(B * L, C)
    mean = jnp.mean(x2, axis=0, keepdims=True)
    var = jnp.mean((x2 - mean) ** 2, axis=0, keepdims=True)
    xn = (x2 - mean) * lax.rsqrt(var + eps) * params["bn_gamma"] + params["bn_beta"]
    h = xn @ params["w1"] + params["b1"]
    h = jax.nn.gelu(h, approximate=False)
    y = h @ params["w2"] + params["b2"]
    return y.reshape(B, L, C)


# ----------------------------------------------------------------------------
if __name__ == "__main__":
    B, L, C, I = 4, 128, 32, 128        # batch=4, seq=128, hidden=32, intermediate=128

    key = jax.random.PRNGKey(0)
    ks = jax.random.split(key, 6)
    x = jax.random.normal(ks[0], (B, L, C), jnp.float32)

    params = dict(
        bn_gamma=jnp.ones((1, C), jnp.float32),                    # BatchNorm1d weight
        bn_beta=jnp.zeros((1, C), jnp.float32),                    # BatchNorm1d bias
        w1=jax.random.normal(ks[1], (C, I), jnp.float32) * 0.05,   # feed_forward.weight.T
        b1=jax.random.normal(ks[2], (1, I), jnp.float32) * 0.01,
        w2=jax.random.normal(ks[3], (I, C), jnp.float32) * 0.05,   # output_dense.weight.T
        b2=jax.random.normal(ks[4], (1, C), jnp.float32) * 0.01,
    )

    out = ff_block_forward(x, params)
    out = jax.block_until_ready(out)

    assert out.shape == (B, L, C), out.shape
    assert bool(jnp.all(jnp.isfinite(out)))

    ref = _ref_forward(x, params)
    assert bool(jnp.allclose(out, ref, atol=1e-4, rtol=1e-4)), \
        float(jnp.max(jnp.abs(out - ref)))

    print("KERNEL_OK")
</pallas_src>

<mosaic_0001>
module attributes {stable_mosaic.version = 11 : i64} {
  func.func @bn_stats_kernel(%arg0: i32, %arg1: memref<64x128xf32, #tpu.memory_space<vmem>>, %arg2: memref<8x128xf32, #tpu.memory_space<vmem>>, %arg3: memref<8x128xf32, #tpu.memory_space<vmem>>) attributes {dimension_semantics = [#tpu.dimension_semantics<parallel>], iteration_bounds = array<i64: 2>, scalar_prefetch = 0 : i64, scratch_operands = 0 : i64, tpu.core_type = #tpu.core_type<tc>, window_params = [{transform_indices = @transform_0, window_bounds = array<i64: 64, 128>}, {transform_indices = @transform_1, window_bounds = array<i64: 8, 128>}, {transform_indices = @transform_2, window_bounds = array<i64: 8, 128>}]} {
    %c0 = arith.constant 0 : index
    %c0_0 = arith.constant 0 : index
    %0 = vector.load %arg1[%c0, %c0_0] : memref<64x128xf32, #tpu.memory_space<vmem>>, vector<64x128xf32>
    %1 = vector.shape_cast %0 : vector<64x128xf32> to vector<8x8x128xf32>
    %cst = arith.constant dense<0.000000e+00> : vector<8x128xf32>
    %2 = vector.multi_reduction <add>, %1, %cst [0] : vector<8x8x128xf32> to vector<8x128xf32>
    %c0_1 = arith.constant 0 : index
    %c0_2 = arith.constant 0 : index
    %3 = vector.load %arg2[%c0_1, %c0_2] : memref<8x128xf32, #tpu.memory_space<vmem>>, vector<8x128xf32>
    tpu.vector_store %arg2[%c0_1, %c0_2], %2 {strides = array<i32>} : memref<8x128xf32, #tpu.memory_space<vmem>>, vector<8x128xf32>,
    %4 = arith.mulf %1, %1 : vector<8x8x128xf32>
    %cst_3 = arith.constant dense<0.000000e+00> : vector<8x128xf32>
    %5 = vector.multi_reduction <add>, %4, %cst_3 [0] : vector<8x8x128xf32> to vector<8x128xf32>
    %c0_4 = arith.constant 0 : index
    %c0_5 = arith.constant 0 : index
    %6 = vector.load %arg3[%c0_4, %c0_5] : memref<8x128xf32, #tpu.memory_space<vmem>>, vector<8x128xf32>
    tpu.vector_store %arg3[%c0_4, %c0_5], %5 {strides = array<i32>} : memref<8x128xf32, #tpu.memory_space<vmem>>, vector<8x128xf32>,
    return
  }
  func.func @transform_0(%arg0: i32) -> (i32, i32) {
    %c0_i32 = arith.constant 0 : i32
    %c0_i32_0 = arith.constant 0 : i32
    return %arg0, %c0_i32 : i32, i32
  }
  func.func @transform_1(%arg0: i32) -> (i32, i32) {
    %c0_i32 = arith.constant 0 : i32
    %c0_i32_0 = arith.constant 0 : i32
    return %arg0, %c0_i32 : i32, i32
  }
  func.func @transform_2(%arg0: i32) -> (i32, i32) {
    %c0_i32 = arith.constant 0 : i32
    %c0_i32_0 = arith.constant 0 : i32
    return %arg0, %c0_i32 : i32, i32
  }
}

</mosaic_0001>

<bundles_post_ra>
// kernel: tpu_custom_call.1
= control target key start
LH: loop header
LB: loop body
LE: loop exit
PB: predicated region body
PF: predicated region fallthrough
CT: control target
= control target key end

     0   :  { %8 = vsyncpa [#allocation3], 0  ;;  %s754_s0 = inlined_call_operand.hbm [shape: f32[128,128], index: 0, kind: input, shape index: {}]   ;;  %s755_s1 = inlined_call_operand.hbm [shape: f32[16,128], index: 1, kind: output, shape index: {0}]   ;;  %s756_s2 = inlined_call_operand.hbm [shape: f32[16,128], index: 2, kind: output, shape index: {1}]  }
   0x1   :  { %10 = vsyncpa [#allocation3 + $0x1], 0 }
   0x2   :  { %11 = vsyncpa [#allocation4], 0 }
   0x3   :  { %13 = vsyncpa [#allocation4 + $0x1], 0 }
   0x4   :  { %14 = vsyncpa [#allocation7], 0 }
   0x5   :  { %16 = vsyncpa [#allocation7 + $0x1], 0  ;;  %s560_s9 = smov 0   ;;  %s562_s10 = smov 0  }
   0x6   :  { %s564_s11 = smov 0   ;;  %s566_s12 = smov 0  }
   0x7 LB: > { %s581_s13 = sadd.s32 4294967295, %s538_s12   ;;  %s340_s14 = sadd.s32 4294967294, %s538_s12   ;;  %s538_s12 = sphi %s566_s12, %s769_s12   ;;  %s534_s11 = sphi %s564_s11, %s768_s11   ;;  %s530_s10 = sphi %s562_s10, %s767_s10   ;;  %s526_s9 = sphi %s560_s9, %s766_s9  }
   0x8   : > { %s585_s15 = sadd.s32 1, %s538_s12   ;;  %s29_s16 = sadd.s32 1, %s534_s11 }
   0x9   : > { %s26_s17 = ssub.s32 %s538_s12, %s585_s15  ;;  %p36_p0 = scmp.ne.s32.totalorder %s534_s11, %s530_s10 }
   0xa   : > { %p27_p1 = scmp.eq.s32.totalorder %s26_s17, 0  ;;  %p37_p2 = scmp.eq.s32.totalorder %s538_s12, 0 }
   0xb   : > { %p42_p3 = scmp.ne.s32.totalorder %s530_s10, %s526_s9  ;;  %p43_p4 = scmp.eq.s32.totalorder %s581_s13, 0 }
   0xc   : > { %s597_s18 = scalar_select %p27_p1, %s534_s11, %s29_s16  }
   0xd   : > { %p599_p5 = por %p37_p2, %p36_p0  ;;  %p603_p6 = por %p43_p4, %p42_p3 }
   0xe   : > { %p66_p7 = scmp.eq.s32.totalorder %s581_s13, 1  ;;  %p72_p8 = scmp.eq.s32.totalorder %s340_s14, 1 }
   0xf   : > { %p374_p10 = scmp.lt.s32.totalorder %s538_s12, 2  ;;  %s118_s23 = sand.u32 1, %s534_s11  }
  0x10   : > { %p610_p11 = por %p66_p7, %p36_p0  ;;  %p614_p12 = por %p72_p8, %p42_p3 }
  0x11   : > { %s356_s24 = sshll.u32 %s538_s12, 10  ;;  %s343_s25 = sshll.u32 %s118_s23, 6 }
  0x12   : > { %s760_s21 = scalar_select %p610_p11, 1, 0 }
  0x13   : > { %s761_s22 = scalar_select %p614_p12, 1, 0 }
  0x14   : > { %s623_s28 = scalar_lea.hbm %s754_s0, %s356_s24  ;;  %s122_s29 = scalar_lea.vmem [#allocation2], %s343_s25 }
  0x15   : > { %s129_s30 = sshll.u32 %s122_s29, 4  ;;  %p627_p13 = pnand %p374_p10, %p599_p5  ;;  %s631_s30 = int_to_ptr.vmem [resolvable:$true] %s129_s30 }
  0x16   : > { %s633_s4 = scalar_lea.sflag [#allocation3], %s118_s23  ;;  %s410_s5 = scalar_lea.hbm %s623_s28, 1024 }
  0x17   : > { %p411_p0 = scmp.ne.s32.totalorder %s623_s28, %s410_s5  ;;  %p412_p1 = pneg %p627_p13 }
  0x18   : > { %s415_s8 = scalar_lea.hbm %s754_s0, 2048  ;;  %p416_p4 = scmp.lt.u32.totalorder %s623_s28, %s754_s0 }
  0x19   : > { %p413_p2 = pnand %p412_p1, %p411_p0  ;;  %p417_p5 = scmp.lt.u32.totalorder %s415_s8, %s410_s5 }
  0x1a   : > { %p419_p8 = scmp.lt.u32.totalorder %s410_s5, %s623_s28 }
  0x1b   : > { %p414_p3 = pneg %p413_p2  ;;  %p418_p7 = por %p417_p5, %p416_p4 }
  0x1d   : > { %p420_p10 = por %p419_p8, %p418_p7 }
  0x1f   : > { %p421_p9 = pnand %p420_p10, %p414_p3 }
  0x21   : > { %424 = shalt.err (!%p421_p9)
}
  0x22   : > { %s425_s17 = scalar_lea.vmem %s631_s30, 1024  ;;  %s540_s19 = smov [#allocation2]  }
  0x23   : > { %p426_p0 = scmp.ne.s32.totalorder %s631_s30, %s425_s17  ;;  %s430_s23 = sshll.u32 %s540_s19, 4  ;;  %s431_s23 = int_to_ptr.vmem [resolvable:$false] %s430_s23 }
  0x24   : > { %s432_s24 = scalar_lea.vmem %s431_s23, 2048  ;;  %p433_p11 = scmp.lt.s32.totalorder %s631_s30, %s431_s23 }
  0x25   : > { %p428_p2 = pnand %p426_p0, %p412_p1  ;;  %p434_p4 = scmp.lt.s32.totalorder %s432_s24, %s425_s17 }
  0x27   : > { %p429_p12 = pneg %p428_p2  ;;  %p435_p5 = por %p434_p4, %p433_p11 }
  0x29   : > { %p436_p7 = pnand %p435_p5, %p429_p12 }
  0x2b   : > { %439 = shalt.err (!%p436_p7)
}
  0x2c   : > { %s541_s25 = smov 128   ;;  %s542_s26 = smov 8  }
  0x2d   : > { %366 = dma.hbm_to_vmem [thread:$0]  (!%p627_p13), %s623_s28, 1024, %s631_s30, %s633_s4, %s541_s25, %s541_s25, %s542_s26  }
  0x2e   : > { %p346_p9 = scmp.ge.s32.totalorder %s538_s12, 1  ;;  %p137_p1 = scmp.lt.s32.totalorder %s538_s12, 3 }
  0x30   : > { %p138_p3 = pnand %p346_p9, %p137_p1 }
  0x31   : > { %s664_s27 = sand.u32 (!%p138_p3), 1, %s530_s10  }
  0x32   : > { %141 = sbr.rel (%p138_p3) target bundleno = 110 (0x6e), region = 24  ;;  %s347_s29 = sshll.u32 (!%p138_p3), %s664_s27, 6 }
  0x33   : > { %s144_s5 = scalar_lea.sflag (!%p138_p3), [#allocation3], %s664_s27  ;;  %s147_s6 = scalar_lea.vmem (!%p138_p3), [#allocation2], %s347_s29 }
  0x39   : > { %513 = dma.done.wait (%p603_p6), %s144_s5, 1024  }
  0x3a   : > { %515 = vsyncadd (%p603_p6), %s144_s5, 4294966272  ;;  %v174_v0 = vld [vmem:[%s147_s6] sm:$0xff]  ;;  %v175_v1 = vld [vmem:[%s147_s6 + $0x8] sm:$0xff]  ;;  %s348_s28 = sshll.u32 %s664_s27, 3  ;;  %s352_s3 = sshll.u32 %s581_s13, 7 }
  0x3b   : > { %v176_v2 = vld [vmem:[%s147_s6 + $0x10] sm:$0xff]  ;;  %v177_v3 = vld [vmem:[%s147_s6 + $0x18] sm:$0xff]  ;;  %v182_v4 = vadd.f32 %v175_v1, %v174_v0  ;;  %v190_v5 = vmul.f32 %v174_v0, %v174_v0  ;;  %v191_v6 = vmul.f32 %v175_v1, %v175_v1  ;;  %v178_v8 = vld [vmem:[%s147_s6 + $0x20] sm:$0xff]  ;;  %s165_s20 = scalar_lea.vmem [#allocation5], %s348_s28  ;;  %s674_s4 = scalar_lea.vmem [#allocation6], %s348_s28 }
  0x3c   : > { %v192_v7 = vmul.f32 %v176_v2, %v176_v2  ;;  %v193_v10 = vmul.f32 %v177_v3, %v177_v3  ;;  %v179_v12 = vld [vmem:[%s147_s6 + $0x28] sm:$0xff]  ;;  %v194_v14 = vmul.f32 %v178_v8, %v178_v8  ;;  %v180_v16 = vld [vmem:[%s147_s6 + $0x30] sm:$0xff]  ;;  %v181_v20 = vld [vmem:[%s147_s6 + $0x38] sm:$0xff]  ;;  %s225_s30 = sshll.u32 %s165_s20, 4  ;;  %s238_s7 = sshll.u32 %s674_s4, 4  ;;  %s677_s30 = int_to_ptr.vmem [resolvable:$true] %s225_s30  ;;  %s684_s7 = int_to_ptr.vmem [resolvable:$true] %s238_s7 }
  0x3d   : > { %v183_v9 = vadd.f32 %v182_v4, %v176_v2  ;;  %v198_v11 = vadd.f32 %v191_v6, %v190_v5  ;;  %v195_v18 = vmul.f32 %v179_v12, %v179_v12  ;;  %v196_v22 = vmul.f32 %v180_v16, %v180_v16  ;;  %s682_s16 = scalar_lea.hbm %s755_s1, %s352_s3  ;;  %s689_s19 = scalar_lea.hbm %s756_s2, %s352_s3 }
  0x3e   : > { %v197_v25 = vmul.f32 %v181_v20, %v181_v20  ;;  %s207_s23 = scalar_lea.sflag [#allocation4], %s664_s27  ;;  %s440_s24 = scalar_lea.vmem %s677_s30, 128 }
  0x3f   : > { %v184_v13 = vadd.f32 %v183_v9, %v177_v3  ;;  %v199_v15 = vadd.f32 %v198_v11, %v192_v7  ;;  %p441_p6 = scmp.ne.s32.totalorder %s677_s30, %s440_s24  ;;  %p763_p11 = scmp.ne.s32.totalorder %s760_s21, 0 }
  0x40   : > { %s543_s25 = smov [#allocation5]  }
  0x41   : > { %v185_v17 = vadd.f32 %v184_v13, %v178_v8  ;;  %v200_v19 = vadd.f32 %v199_v15, %v193_v10  ;;  %p442_p12 = pnand %p441_p6, %p763_p11  ;;  %s444_s26 = sshll.u32 %s543_s25, 4  ;;  %s445_s26 = int_to_ptr.vmem [resolvable:$false] %s444_s26 }
  0x42   : > { %s446_s29 = scalar_lea.vmem %s445_s26, 256  ;;  %p447_p8 = scmp.lt.s32.totalorder %s677_s30, %s445_s26 }
  0x43   : > { %v186_v21 = vadd.f32 %v185_v17, %v179_v12  ;;  %v201_v23 = vadd.f32 %v200_v19, %v194_v14  ;;  %p443_p13 = pneg %p442_p12  ;;  %p448_p10 = scmp.lt.s32.totalorder %s446_s29, %s440_s24 }
  0x45   : > { %v187_v24 = vadd.f32 %v186_v21, %v180_v16  ;;  %v202_v26 = vadd.f32 %v201_v23, %v195_v18  ;;  %p449_p0 = por %p448_p10, %p447_p8 }
  0x47   : > { %v188_v27 = vadd.f32 %v187_v24, %v181_v20  ;;  %v203_v28 = vadd.f32 %v202_v26, %v196_v22  ;;  %p450_p2 = pnand %p449_p0, %p443_p13 }
  0x49   : > { %189 = vst [vmem:[%s165_s20] sm:$0xff] %v188_v27  ;;  %v204_v29 = vadd.f32 %v203_v28, %v197_v25 }
  0x4a   : > { %453 = shalt.err (!%p450_p2)
}
  0x4b   : > { %s454_s5 = scalar_lea.hbm %s682_s16, 128  ;;  %s458_s20 = scalar_lea.hbm %s755_s1, 256 }
  0x4c   : > { %p455_p4 = scmp.ne.s32.totalorder %s682_s16, %s454_s5  ;;  %p459_p9 = scmp.lt.u32.totalorder %s682_s16, %s755_s1 }
  0x4d   : > { %p460_p1 = scmp.lt.u32.totalorder %s458_s20, %s454_s5  ;;  %p462_p6 = scmp.lt.u32.totalorder %s454_s5, %s682_s16 }
  0x4e   : > { %p456_p5 = pnand %p455_p4, %p763_p11 }
  0x4f   : > { %p461_p3 = por %p460_p1, %p459_p9 }
  0x50   : > { %p457_p7 = pneg %p456_p5 }
  0x51   : > { %p463_p12 = por %p462_p6, %p461_p3 }
  0x53   : > { %p464_p13 = pnand %p463_p12, %p457_p7 }
  0x55   : > { %467 = shalt.err (!%p464_p13)
}
  0x56   : > { %359 = dma.vmem_to_hbm [thread:$0]  (%p763_p11), %s677_s30, 128, %s682_s16, %s207_s23   ;;  %205 = vst [vmem:[%s674_s4] sm:$0xff] %v204_v29 }
  0x57   : > { %s212_s14 = scalar_lea.sflag [#allocation7], %s664_s27  ;;  %s468_s13 = scalar_lea.vmem %s684_s7, 128 }
  0x58   : > { %p469_p8 = scmp.ne.s32.totalorder %s684_s7, %s468_s13  ;;  %s544_s17 = smov [#allocation6]  }
  0x59   : > { %s472_s24 = sshll.u32 %s544_s17, 4  ;;  %s473_s24 = int_to_ptr.vmem [resolvable:$false] %s472_s24 }
  0x5a   : > { %p470_p10 = pnand %p469_p8, %p763_p11  ;;  %s474_s25 = scalar_lea.vmem %s473_s24, 256 }
  0x5b   : > { %p475_p2 = scmp.lt.s32.totalorder %s684_s7, %s473_s24  ;;  %p476_p4 = scmp.lt.s32.totalorder %s474_s25, %s468_s13 }
  0x5c   : > { %p471_p0 = pneg %p470_p10 }
  0x5d   : > { %p477_p5 = por %p476_p4, %p475_p2 }
  0x5f   : > { %p478_p7 = pnand %p477_p5, %p471_p0 }
  0x61   : > { %481 = shalt.err (!%p478_p7)
}
  0x62   : > { %s482_s27 = scalar_lea.hbm %s689_s19, 128  ;;  %s486_s16 = scalar_lea.hbm %s756_s2, 256 }
  0x63   : > { %p483_p9 = scmp.ne.s32.totalorder %s689_s19, %s482_s27  ;;  %p487_p6 = scmp.lt.u32.totalorder %s689_s19, %s756_s2 }
  0x64   : > { %p488_p12 = scmp.lt.u32.totalorder %s486_s16, %s482_s27  ;;  %p490_p8 = scmp.lt.u32.totalorder %s482_s27, %s689_s19 }
  0x65   : > { %p484_p1 = pnand %p483_p9, %p763_p11 }
  0x66   : > { %p489_p13 = por %p488_p12, %p487_p6 }
  0x67   : > { %p485_p3 = pneg %p484_p1 }
  0x68   : > { %p491_p10 = por %p490_p8, %p489_p13 }
  0x6a   : > { %p492_p0 = pnand %p491_p10, %p485_p3 }
  0x6c   : > { %495 = shalt.err (!%p492_p0)
}
  0x6d   : > { %360 = dma.vmem_to_hbm [thread:$0]  (%p763_p11), %s684_s7, 128, %s689_s19, %s212_s14  }
  0x6e PF: > { %s250_s29 = sand.u32 1, %s526_s9   ;;  %p764_p2 = scmp.ne.s32.totalorder %s761_s22, 0 }
  0x6f   : > { %p765_p4 = scmp.ge.s32.totalorder %s538_s12, 2  ;;  %s251_s5 = scalar_lea.sflag [#allocation4], %s250_s29 }
  0x71   : > { %p368_p5 = pnand %p765_p4, %p764_p2 }
  0x73   : > { %517 = dma.done.wait (!%p368_p5), %s251_s5, 128  }
  0x74   : > { %519 = vsyncadd (!%p368_p5), %s251_s5, 4294967168  ;;  %s260_s6 = scalar_lea.sflag [#allocation7], %s250_s29 }
  0x75   : > { %521 = dma.done.wait (!%p368_p5), %s260_s6, 128  }
  0x76   : > { %523 = vsyncadd (!%p368_p5), %s260_s6, 4294967168  ;;  %p19_p11 = scmp.ge.s32.totalorder %s585_s15, 4   ;;  %s766_s9 = smov %s530_s10 }
  0x77   : > { %s767_s10 = smov %s534_s11  ;;  %s768_s11 = smov %s597_s18 }
  0x78   : > { %s769_s12 = smov %s585_s15  ;;  %21 = sbr.rel (!%p19_p11) target bundleno = 7 (0x7), region = 86 }
  0x7f   :  { %265 = vsyncpa [#allocation3], 1 }
  0x80   :  { %267 = vsyncpa [#allocation3 + $0x1], 1 }
  0x81   :  { %268 = vsyncpa [#allocation4], 1 }
  0x82   :  { %270 = vsyncpa [#allocation4 + $0x1], 1 }
  0x83   :  { %271 = vsyncpa [#allocation7], 1 }
  0x84   :  { %273 = vsyncpa [#allocation7 + $0x1], 1 }

</bundles_post_ra>
